<compile_context>
chip_gen: v7x
topology: tpu7x:2x2x1
jax: 0.10.0
libtpu: 0.0.40
codegen_flags: <defaults>
</compile_context>

<pallas_src>
import functools

import jax
import jax.numpy as jnp
from jax.experimental import pallas as pl
from jax.experimental.pallas import tpu as pltpu


def _contrastive_loss_kernel(anchor_ref, pos_ref, neg_ref, out_ref, *,
                             margin, eps, total_b, tile_b, steps_per_core,
                             need_mask):
    c = pl.program_id(0)
    i = pl.program_id(1)

    # --- init this core's partial-sum block on its first batch tile -----------
    @pl.when(i == 0)
    def _():
        out_ref[...] = jnp.zeros_like(out_ref)

    # --- per-tile compute (upcast to f32 in-register) --------------------------
    a = anchor_ref[...].astype(jnp.float32)
    p = pos_ref[...].astype(jnp.float32)
    n = neg_ref[...].astype(jnp.float32)

    dp = a - p + eps                                              # (TB, D)
    dn = a - n + eps                                              # (TB, D)

    # pos_dist**2 is exactly the lane-reduced squared sum -> skip sqrt/square.
    pos_sq = jnp.sum(dp * dp, axis=-1, keepdims=True)             # (TB, 1)
    neg_sq = jnp.sum(dn * dn, axis=-1, keepdims=True)             # (TB, 1)
    hinge = jnp.maximum(margin - jnp.sqrt(neg_sq), 0.0)           # relu(margin - neg_dist)
    per_row = pos_sq + hinge * hinge                              # (TB, 1)

    # --- mask padded rows (only emitted when padding exists at trace time) -----
    if need_mask:
        row = jax.lax.broadcasted_iota(jnp.int32, per_row.shape, 0)
        start = (c * steps_per_core + i) * tile_b
        valid = (start + row) < total_b
        per_row = jnp.where(valid, per_row, 0.0)

    # --- accumulate partial sum directly into the resident output block --------
    tile_sum = jnp.sum(per_row, axis=0, keepdims=True)            # (1, 1)
    out_ref[...] += tile_sum.reshape(1, 1, 1)


def _vmem_capacity_bytes():
    try:
        info = pltpu.get_tpu_info()
        v = getattr(info, "vmem_capacity_bytes", None)
        if isinstance(v, int) and v > 0:
            return v
    except Exception:
        pass
    return 64 * 1024 * 1024        # conservative fallback (v7x per-TC VMEM)


def _num_tensorcores():
    """Best-effort TensorCore count per device; correctness never depends on it."""
    try:
        info = pltpu.get_tpu_info()
        for attr in ("num_cores", "core_count", "num_tensorcores", "tensorcore_count"):
            v = getattr(info, attr, None)
            if isinstance(v, int) and 1 <= v <= 16:
                return v
    except Exception:
        pass
    try:
        kind = jax.devices()[0].device_kind.lower()
        if ("v7" in kind) or ("v4" in kind) or ("v5p" in kind):
            return 2
    except Exception:
        pass
    return 1


def _sublane_multiple(dtype):
    bits = jnp.dtype(dtype).itemsize * 8
    return max(8, 256 // max(bits, 1))   # 8 for f32, 16 for bf16/fp16, 32 for int8/fp8


def _pick_tile_rows(rows, D, itemsize, data_budget, sub):
    """Batch-tile size: big enough to reach HBM roofline, VMEM-safe everywhere."""
    if rows <= sub:
        return rows                       # tile == full array dim -> always legal
    tb = data_budget // (3 * 2 * D * itemsize)   # 3 inputs x double-buffered
    tb = min(tb, rows)
    tb = max(sub, (tb // sub) * sub)      # dtype-aware sublane alignment
    return int(tb)


def contrastive_loss(anchor, positive, negative, margin=1.0, eps=1e-6):
    """anchor/positive/negative: (B, D) float arrays. Returns scalar float32 loss."""
    B, D = anchor.shape
    itemsize = jnp.dtype(anchor.dtype).itemsize
    sub = _sublane_multiple(anchor.dtype)

    vmem_cap = _vmem_capacity_bytes()
    # ~4 MiB per pipeline buffer (3 inputs x 2 buffers), safe on 64 MiB v7x VMEM.
    data_budget = min(vmem_cap // 3, 24 * 1024 * 1024)
    tb = _pick_tile_rows(B, D, itemsize, data_budget, sub)

    total_blocks = int(pl.cdiv(B, tb))
    num_cores = min(_num_tensorcores(), total_blocks)
    steps = int(pl.cdiv(total_blocks, num_cores))
    need_mask = (num_cores * steps * tb) != B

    used_bytes = 3 * 2 * tb * D * itemsize
    vmem_limit = int(min(max(used_bytes + (8 << 20), 32 << 20), vmem_cap - (4 << 20)))

    kernel = functools.partial(
        _contrastive_loss_kernel,
        margin=float(margin), eps=float(eps), total_b=B, tile_b=tb,
        steps_per_core=steps, need_mask=need_mask,
    )

    def in_map(c, i):
        # Clamp so blocks past the array end never DMA out of range; their rows
        # are zeroed by the ragged mask.
        return (jnp.minimum(c * steps + i, total_blocks - 1), 0)

    in_spec = pl.BlockSpec((tb, D), in_map)

    out = pl.pallas_call(
        kernel,
        out_shape=jax.ShapeDtypeStruct((num_cores, 1, 1), jnp.float32),
        grid_spec=pltpu.PrefetchScalarGridSpec(
            num_scalar_prefetch=0,
            grid=(num_cores, steps),
            in_specs=[in_spec, in_spec, in_spec],
            out_specs=pl.BlockSpec((1, 1, 1), lambda c, i: (c, 0, 0)),
        ),
        compiler_params=pltpu.CompilerParams(
            dimension_semantics=("parallel", "arbitrary"),
            vmem_limit_bytes=vmem_limit,
        ),
        cost_estimate=pl.CostEstimate(
            flops=10 * B * D,
            transcendentals=B,
            bytes_accessed=3 * B * D * itemsize + 4 * num_cores,
        ),
    )(anchor, positive, negative)

    # Sum the per-core partials and take the global mean in the wrapper.
    return jnp.sum(out) / B


def _reference_loss(anchor, positive, negative, margin=1.0, eps=1e-6):
    a = anchor.astype(jnp.float32)
    p = positive.astype(jnp.float32)
    n = negative.astype(jnp.float32)
    pos_dist = jnp.sqrt(jnp.sum((a - p + eps) ** 2, axis=-1))
    neg_dist = jnp.sqrt(jnp.sum((a - n + eps) ** 2, axis=-1))
    return jnp.mean(pos_dist ** 2 + jnp.maximum(margin - neg_dist, 0.0) ** 2)


if __name__ == "__main__":
    key = jax.random.PRNGKey(0)

    # Test 1: small single-tile case (B <= sublane multiple).
    B, D = 8, 32
    ka, kp, kn, key = jax.random.split(key, 4)
    anchor = jax.random.normal(ka, (B, D), dtype=jnp.float32)
    positive = jax.random.normal(kp, (B, D), dtype=jnp.float32)
    negative = jax.random.normal(kn, (B, D), dtype=jnp.float32)

    loss = jax.block_until_ready(contrastive_loss(anchor, positive, negative, margin=1.0))
    ref = _reference_loss(anchor, positive, negative, margin=1.0)
    assert jnp.allclose(loss, ref, rtol=1e-5, atol=1e-5), (loss, ref)

    # Test 2: multi-tile grid with a ragged last tile (masking + accumulation
    # + per-core partial sums).
    B2, D2 = 50, 96
    ka, kp, kn, key = jax.random.split(key, 4)
    anchor2 = jax.random.normal(ka, (B2, D2), dtype=jnp.float32)
    positive2 = jax.random.normal(kp, (B2, D2), dtype=jnp.float32)
    negative2 = jax.random.normal(kn, (B2, D2), dtype=jnp.float32)

    loss2 = jax.block_until_ready(contrastive_loss(anchor2, positive2, negative2, margin=1.0))
    ref2 = _reference_loss(anchor2, positive2, negative2, margin=1.0)
    assert jnp.allclose(loss2, ref2, rtol=1e-5, atol=1e-5), (loss2, ref2)

    print("KERNEL_OK")
</pallas_src>

<mosaic_0001>
module attributes {stable_mosaic.version = 11 : i64} {
  func.func @_contrastive_loss_kernel(%arg0: i32, %arg1: i32, %arg2: memref<8x32xf32, #tpu.memory_space<vmem>>, %arg3: memref<8x32xf32, #tpu.memory_space<vmem>>, %arg4: memref<8x32xf32, #tpu.memory_space<vmem>>, %arg5: memref<1x1x1xf32, #tpu.memory_space<vmem>>) attributes {dimension_semantics = [#tpu.dimension_semantics<parallel>, #tpu.dimension_semantics<arbitrary>], iteration_bounds = array<i64: 1, 1>, scalar_prefetch = 0 : i64, scratch_operands = 0 : i64, tpu.core_type = #tpu.core_type<tc>, window_params = [{transform_indices = @transform_0, window_bounds = array<i64: 8, 32>}, {transform_indices = @transform_1, window_bounds = array<i64: 8, 32>}, {transform_indices = @transform_2, window_bounds = array<i64: 8, 32>}, {transform_indices = @transform_3, window_bounds = array<i64: 1, 1, 1>}]} {
    %c0_i32 = arith.constant 0 : i32
    %0 = arith.cmpi eq, %arg1, %c0_i32 : i32
    %1 = arith.extui %0 : i1 to i32
    %c0_i32_0 = arith.constant 0 : i32
    %2 = arith.cmpi ne, %1, %c0_i32_0 : i32
    scf.if %2 {
      %cst_18 = arith.constant 0.000000e+00 : f32
      %31 = vector.broadcast %cst_18 : f32 to vector<1x1x1xf32>
      %c0_19 = arith.constant 0 : index
      %c0_20 = arith.constant 0 : index
      %c0_21 = arith.constant 0 : index
      %32 = vector.load %arg5[%c0_19, %c0_20, %c0_21] : memref<1x1x1xf32, #tpu.memory_space<vmem>>, vector<1x1x1xf32>
      tpu.vector_store %arg5[%c0_19, %c0_20, %c0_21], %31 {strides = array<i32>} : memref<1x1x1xf32, #tpu.memory_space<vmem>>, vector<1x1x1xf32>,
    } else {
    }
    %c0 = arith.constant 0 : index
    %c0_1 = arith.constant 0 : index
    %3 = vector.load %arg2[%c0, %c0_1] : memref<8x32xf32, #tpu.memory_space<vmem>>, vector<8x32xf32>
    %c0_2 = arith.constant 0 : index
    %c0_3 = arith.constant 0 : index
    %4 = vector.load %arg3[%c0_2, %c0_3] : memref<8x32xf32, #tpu.memory_space<vmem>>, vector<8x32xf32>
    %c0_4 = arith.constant 0 : index
    %c0_5 = arith.constant 0 : index
    %5 = vector.load %arg4[%c0_4, %c0_5] : memref<8x32xf32, #tpu.memory_space<vmem>>, vector<8x32xf32>
    %6 = arith.subf %3, %4 : vector<8x32xf32>
    %cst = arith.constant 9.99999997E-7 : f32
    %7 = vector.broadcast %cst : f32 to vector<8x32xf32>
    %8 = arith.addf %6, %7 : vector<8x32xf32>
    %9 = arith.subf %3, %5 : vector<8x32xf32>
    %cst_6 = arith.constant 9.99999997E-7 : f32
    %10 = vector.broadcast %cst_6 : f32 to vector<8x32xf32>
    %11 = arith.addf %9, %10 : vector<8x32xf32>
    %12 = arith.mulf %8, %8 : vector<8x32xf32>
    %cst_7 = arith.constant dense<0.000000e+00> : vector<8xf32>
    %13 = vector.multi_reduction <add>, %12, %cst_7 [1] : vector<8x32xf32> to vector<8xf32>
    %14 = vector.shape_cast %13 : vector<8xf32> to vector<8x1xf32>
    %15 = arith.mulf %11, %11 : vector<8x32xf32>
    %cst_8 = arith.constant dense<0.000000e+00> : vector<8xf32>
    %16 = vector.multi_reduction <add>, %15, %cst_8 [1] : vector<8x32xf32> to vector<8xf32>
    %17 = vector.shape_cast %16 : vector<8xf32> to vector<8x1xf32>
    %18 = math.sqrt %17 : vector<8x1xf32>
    %cst_9 = arith.constant 1.000000e+00 : f32
    %19 = vector.broadcast %cst_9 : f32 to vector<8x1xf32>
    %20 = arith.subf %19, %18 : vector<8x1xf32>
    %cst_10 = arith.constant 0.000000e+00 : f32
    %21 = vector.broadcast %cst_10 : f32 to vector<8x1xf32>
    %22 = arith.maximumf %20, %21 : vector<8x1xf32>
    %23 = arith.mulf %22, %22 : vector<8x1xf32>
    %24 = arith.addf %14, %23 : vector<8x1xf32>
    %cst_11 = arith.constant dense<0.000000e+00> : vector<1xf32>
    %25 = vector.multi_reduction <add>, %24, %cst_11 [0] : vector<8x1xf32> to vector<1xf32>
    %26 = vector.shape_cast %25 : vector<1xf32> to vector<1x1xf32>
    %c0_12 = arith.constant 0 : index
    %c0_13 = arith.constant 0 : index
    %c0_14 = arith.constant 0 : index
    %27 = vector.load %arg5[%c0_12, %c0_13, %c0_14] : memref<1x1x1xf32, #tpu.memory_space<vmem>>, vector<1x1x1xf32>
    %28 = vector.shape_cast %26 : vector<1x1xf32> to vector<1x1x1xf32>
    %29 = arith.addf %27, %28 : vector<1x1x1xf32>
    %c0_15 = arith.constant 0 : index
    %c0_16 = arith.constant 0 : index
    %c0_17 = arith.constant 0 : index
    %30 = vector.load %arg5[%c0_15, %c0_16, %c0_17] : memref<1x1x1xf32, #tpu.memory_space<vmem>>, vector<1x1x1xf32>
    tpu.vector_store %arg5[%c0_15, %c0_16, %c0_17], %29 {strides = array<i32>} : memref<1x1x1xf32, #tpu.memory_space<vmem>>, vector<1x1x1xf32>,
    return
  }
  func.func @transform_0(%arg0: i32, %arg1: i32) -> (i32, i32) {
    %c1_i32 = arith.constant 1 : i32
    %0 = arith.muli %arg0, %c1_i32 : i32
    %1 = arith.addi %0, %arg1 : i32
    %c0_i32 = arith.constant 0 : i32
    %2 = arith.minsi %1, %c0_i32 : i32
    %c0_i32_0 = arith.constant 0 : i32
    %c0_i32_1 = arith.constant 0 : i32
    return %2, %c0_i32_0 : i32, i32
  }
  func.func @transform_1(%arg0: i32, %arg1: i32) -> (i32, i32) {
    %c1_i32 = arith.constant 1 : i32
    %0 = arith.muli %arg0, %c1_i32 : i32
    %1 = arith.addi %0, %arg1 : i32
    %c0_i32 = arith.constant 0 : i32
    %2 = arith.minsi %1, %c0_i32 : i32
    %c0_i32_0 = arith.constant 0 : i32
    %c0_i32_1 = arith.constant 0 : i32
    return %2, %c0_i32_0 : i32, i32
  }
  func.func @transform_2(%arg0: i32, %arg1: i32) -> (i32, i32) {
    %c1_i32 = arith.constant 1 : i32
    %0 = arith.muli %arg0, %c1_i32 : i32
    %1 = arith.addi %0, %arg1 : i32
    %c0_i32 = arith.constant 0 : i32
    %2 = arith.minsi %1, %c0_i32 : i32
    %c0_i32_0 = arith.constant 0 : i32
    %c0_i32_1 = arith.constant 0 : i32
    return %2, %c0_i32_0 : i32, i32
  }
  func.func @transform_3(%arg0: i32, %arg1: i32) -> (i32, i32, i32) {
    %c0_i32 = arith.constant 0 : i32
    %c0_i32_0 = arith.constant 0 : i32
    %c0_i32_1 = arith.constant 0 : i32
    return %arg0, %c0_i32, %c0_i32_0 : i32, i32, i32
  }
}

</mosaic_0001>

<bundles_post_ra>
// kernel: tpu_custom_call.1
= control target key start
LH: loop header
LB: loop body
LE: loop exit
PB: predicated region body
PF: predicated region fallthrough
CT: control target
= control target key end

     0   :  { %8 = vsyncpa [#allocation3], 0  ;;  %s315_s0 = inlined_call_operand.hbm [shape: f32[8,32], index: 0, kind: input, shape index: {}]   ;;  %s316_s1 = inlined_call_operand.hbm [shape: f32[8,32], index: 1, kind: input, shape index: {}]   ;;  %s317_s2 = inlined_call_operand.hbm [shape: f32[8,32], index: 2, kind: input, shape index: {}]   ;;  %s318_s3 = inlined_call_operand.hbm [shape: f32[1,1,1], index: 3, kind: output, shape index: {}]  }
   0x1   :  { %9 = vsyncpa [#allocation6], 0 }
   0x2   :  { %10 = vsyncpa [#allocation4], 0  ;;  %s240_s12 = smov [#allocation5]   ;;  %s241_s14 = smov [#allocation2]  }
   0x3   :  { %s37_s13 = sshll.u32 %s240_s12, 4  ;;  %s22_s15 = sshll.u32 %s241_s14, 4  ;;  %s38_s13 = int_to_ptr.vmem [resolvable:$true] %s37_s13  ;;  %s23_s15 = int_to_ptr.vmem [resolvable:$true] %s22_s15 }
   0x4   :  { %s146_s18 = scalar_lea.hbm %s316_s1, 128 }
   0x5   :  { %p147_p0 = scmp.ne.s32.totalorder %s316_s1, %s146_s18  ;;  %p150_p1 = scmp.lt.u32.totalorder %s146_s18, %s316_s1 }
   0x7   :  { %p152_p2 = pnand %p150_p1, %p147_p0 }
   0x9   :  { %155 = shalt.err (!%p152_p2)
}
   0xa   :  { %s156_s23 = scalar_lea.vmem %s38_s13, 128  ;;  %p161_p4 = scmp.lt.s32.totalorder %s38_s13, %s38_s13 }
   0xb   :  { %p157_p3 = scmp.ne.s32.totalorder %s38_s13, %s156_s23  ;;  %p162_p5 = scmp.lt.s32.totalorder %s156_s23, %s156_s23 }
   0xd   :  { %p163_p6 = por %p162_p5, %p161_p4 }
   0xf   :  { %p164_p7 = pnand %p163_p6, %p157_p3 }
  0x11   :  { %167 = shalt.err (!%p164_p7)
}
  0x12   :  { %40 = dma.hbm_to_vmem [thread:$0]  %s316_s1, 128, %s38_s13, [#allocation6]  }
  0x13   :  { %s168_s28 = scalar_lea.hbm %s315_s0, 128 }
  0x14   :  { %p169_p8 = scmp.ne.s32.totalorder %s315_s0, %s168_s28  ;;  %p172_p9 = scmp.lt.u32.totalorder %s168_s28, %s315_s0 }
  0x16   :  { %p174_p10 = pnand %p172_p9, %p169_p8 }
  0x18   :  { %177 = shalt.err (!%p174_p10)
}
  0x19   :  { %s178_s6 = scalar_lea.vmem %s23_s15, 128  ;;  %p183_p12 = scmp.lt.s32.totalorder %s23_s15, %s23_s15 }
  0x1a   :  { %p179_p11 = scmp.ne.s32.totalorder %s23_s15, %s178_s6  ;;  %p184_p13 = scmp.lt.s32.totalorder %s178_s6, %s178_s6 }
  0x1c   :  { %p185_p0 = por %p184_p13, %p183_p12 }
  0x1e   :  { %p186_p1 = pnand %p185_p0, %p179_p11 }
  0x20   :  { %189 = shalt.err (!%p186_p1)
}
  0x21   :  { %25 = dma.hbm_to_vmem [thread:$0]  %s315_s0, 128, %s23_s15, [#allocation3]  }
  0x22   :  { %s242_s8 = smov [#allocation7]   ;;  %s190_s12 = scalar_lea.hbm %s317_s2, 128 }
  0x23   :  { %s52_s9 = sshll.u32 %s242_s8, 4  ;;  %p191_p2 = scmp.ne.s32.totalorder %s317_s2, %s190_s12  ;;  %s53_s9 = int_to_ptr.vmem [resolvable:$true] %s52_s9 }
  0x24   :  { %p194_p3 = scmp.lt.u32.totalorder %s190_s12, %s317_s2 }
  0x26   :  { %p196_p4 = pnand %p194_p3, %p191_p2 }
  0x28   :  { %199 = shalt.err (!%p196_p4)
}
  0x29   :  { %s200_s18 = scalar_lea.vmem %s53_s9, 128  ;;  %p205_p6 = scmp.lt.s32.totalorder %s53_s9, %s53_s9 }
  0x2a   :  { %p201_p5 = scmp.ne.s32.totalorder %s53_s9, %s200_s18  ;;  %p206_p7 = scmp.lt.s32.totalorder %s200_s18, %s200_s18 }
  0x2c   :  { %p207_p8 = por %p206_p7, %p205_p6 }
  0x2e   :  { %p208_p9 = pnand %p207_p8, %p201_p5 }
  0x30   :  { %211 = shalt.err (!%p208_p9)
}
  0x31   :  { %55 = dma.hbm_to_vmem [thread:$0]  %s317_s2, 128, %s53_s9, [#allocation6]  }
  0x32   :  { %234 = dma.done.wait [#allocation3], 128  }
  0x33   :  { %235 = vsyncadd [#allocation3], 4294967168 }
  0x34   :  { %236 = dma.done.wait [#allocation6], 256  }
  0x35   :  { %237 = vsyncadd [#allocation6], 4294967040  ;;  %v80_v0 = vld [vmem:[#allocation2] sm:$0xff]  ;;  %v82_v1 = vld [vmem:[#allocation7] sm:$0xff]  ;;  %vm88_vm0 = vcmask 261120   ;;  %vm78_vm1 = vcmask 0  }
  0x36   :  { %v81_v2 = vld [vmem:[#allocation5] sm:$0xff]  ;;  %v85_v3 = vsub.f32 %v80_v0, %v82_v1  ;;  %v243_v11 = vmov 0.0   ;;  %s244_s2 = smov [#allocation8]  }
  0x37   :  { %v83_v4 = vsub.f32 %v80_v0, %v81_v2  ;;  %79 = vst.msk [vmem:[#allocation8] sm:$0x1] %vm78_vm1, %v243_v11  ;;  %s123_s19 = sshll.u32 %s244_s2, 4  ;;  %s124_s19 = int_to_ptr.vmem [resolvable:$true] %s123_s19 }
  0x38   :  { %v86_v5 = vadd.f32 1e-06, %v85_v3  ;;  %s212_s20 = scalar_lea.vmem %s124_s19, 16  ;;  %s216_s21 = scalar_lea.vmem %s124_s19, 32 }
  0x39   :  { %v84_v6 = vadd.f32 1e-06, %v83_v4  ;;  %p213_p10 = scmp.ne.s32.totalorder %s124_s19, %s212_s20  ;;  %p217_p11 = scmp.lt.s32.totalorder %s124_s19, %s124_s19 }
  0x3a   :  { %v92_v7 = vmul.f32 %v86_v5, %v86_v5  ;;  %p218_p12 = scmp.lt.s32.totalorder %s216_s21, %s212_s20 }
  0x3b   :  { %v87_v8 = vmul.f32 %v84_v6, %v84_v6 }
  0x3c   :  { %v93_v9 = vsel %vm88_vm0, %v92_v7, 0.0  ;;  %p219_p13 = por %p218_p12, %p217_p11 }
  0x3d   :  { %94 = vadd.xlane.f32.xlu0 %v93_v9  ;;  %v89_v10 = vsel %vm88_vm0, %v87_v8, 0.0 }
  0x3e   :  { %v113_v28 = vld [vmem:[#allocation8] sm:$0x1]  ;;  %p220_p0 = pnand %p219_p13, %p213_p10 }
  0x41   :  { %90 = vadd.xlane.f32.xlu0 %v89_v10 }
  0xca   :  { %v95_v12 = vpop.xlane.xlu0 %94 }
  0xcb   :  { %144 = vrsqrt.f32 %v95_v12  ;;  %vm98_vm2 = vcmp.eq.f32.partialorder %v95_v12, inf  ;;  %v101_v15 = vand.u32 2147483648, %v95_v12  ;;  %vm100_vm3 = vcmp.eq.f32.partialorder %v95_v12, 0.0 }
  0xce   :  { %v91_v20 = vpop.xlane.xlu0 %90 }
  0xd5   :  { %v145_v13 = vpop.eup %144 }
  0xd6   :  { %v97_v14 = vmul.f32 %v145_v13, %v95_v12 }
  0xd8   :  { %v99_v16 = vsel %vm98_vm2, %v95_v12, %v97_v14 }
  0xd9   :  { %v102_v17 = vsel %vm100_vm3, %v101_v15, %v99_v16 }
  0xda   :  { %v103_v18 = vsub.f32 1.0, %v102_v17 }
  0xdc   :  { %v104_v19 = vmax.f32 %v103_v18, 0.0 }
  0xde   :  { %v105_v21 = vmul.f32 %v104_v19, %v104_v19 }
  0xe0   :  { %v106_v22 = vadd.f32 %v105_v21, %v91_v20 }
  0xe2   :  { %v107_v23 = vrot.slane %v106_v22, 4 }
  0xe4   :  { %v108_v24 = vadd.f32 %v107_v23, %v106_v22 }
  0xe6   :  { %v109_v25 = vrot.slane %v108_v24, 2 }
  0xe8   :  { %v110_v26 = vadd.f32 %v109_v25, %v108_v24 }
  0xea   :  { %v111_v27 = vrot.slane %v110_v26, 1 }
  0xec   :  { %v112_v29 = vadd.f32 %v111_v27, %v110_v26 }
  0xee   :  { %v114_v30 = vadd.f32 %v113_v28, %v112_v29 }
  0xf0   :  { %116 = vst.msk [vmem:[#allocation8] sm:$0x1] %vm78_vm1, %v114_v30 }
  0xf1   :  { %223 = shalt.err (!%p220_p0)
}
  0xf2   :  { %s224_s24 = scalar_lea.hbm %s318_s3, 16 }
  0xf3   :  { %p225_p1 = scmp.ne.s32.totalorder %s318_s3, %s224_s24  ;;  %p228_p2 = scmp.lt.u32.totalorder %s224_s24, %s318_s3 }
  0xf5   :  { %p230_p3 = pnand %p228_p2, %p225_p1 }
  0xf7   :  { %233 = shalt.err (!%p230_p3)
}
  0xf8   :  { %126 = dma.vmem_to_hbm [thread:$0]  %s124_s19, 16, %s318_s3, [#allocation4]  }
  0xf9   :  { %238 = dma.done.wait [#allocation4], 16  }
  0xfa   :  { %239 = vsyncadd [#allocation4], 4294967280 }
  0xfb   :  { %130 = vsyncpa [#allocation3], 1 }
  0xfc   :  { %131 = vsyncpa [#allocation6], 1 }
  0xfd   :  { %132 = vsyncpa [#allocation4], 1 }

</bundles_post_ra>
